<compile_context>
chip_gen: v6e
topology: v6e:2x2x1
jax: 0.10.0
libtpu: 0.0.40
codegen_flags: <defaults>
</compile_context>

<pallas_src>
import functools

import jax
import jax.numpy as jnp
from jax.experimental import pallas as pl
from jax.experimental.pallas import tpu as pltpu


# ----------------------------- Pallas kernel ------------------------------ #
def _attn_decoder_kernel(x_ref, h0_ref, enc_ref, w_ref, b_ref, out_ref, h_sc,
                         *, B, S, H, I, O, woff, boff, compute_dtype):
    t = pl.program_id(0)
    cdt = compute_dtype

    # Load the initial hidden state into the carried VMEM scratch on step 0 only.
    @pl.when(t == 0)
    def _():
        h_sc[...] = h0_ref[...]

    h = h_sc[...]                                   # (B, H)   f32, carried across steps
    x = x_ref[0]                                    # (B, I)   f32, streamed per step
    enc = enc_ref[...]                              # (B*S, H) f32, resident across steps
    enc3 = enc.reshape(B, S, H)                     # computed once, reused (energy + ctx)

    # ---- fused h projection over the padded 128-wide group: [W_hh | W1] -> (B, 128)
    hh = jnp.dot(h.astype(cdt), w_ref[:H, woff["w_h"]:woff["w_h"] + 128],
                 preferred_element_type=jnp.float32) \
        + b_ref[:, boff["b_h"]:boff["b_h"] + 128]
    gh = hh[:, :3 * H]                              # GRU hidden-side gates (+ b_hh)
    w1h = hh[:, 3 * H:4 * H]                        # W1(h) + b1

    # ---- Bahdanau attention (v_b dropped: softmax shift invariance)
    w2e = (jnp.dot(enc.astype(cdt), w_ref[:H, woff["w2"]:woff["w2"] + 128],
                   preferred_element_type=jnp.float32)
           + b_ref[:, boff["b2"]:boff["b2"] + 128])[:, :H]        # (B*S, H)
    energy = jnp.tanh(w1h[:, None, :] + w2e.reshape(B, S, H))     # (B, S, H)
    v = b_ref[:, boff["v_w"]:boff["v_w"] + H]                     # (1, H)
    scores = jnp.sum(energy * v, axis=-1)                         # (B, S)
    m = jnp.max(scores, axis=1, keepdims=True)
    e = jnp.exp(scores - m)
    attn = e * pl.reciprocal(jnp.sum(e, axis=1, keepdims=True), approx=True)

    ctx = jnp.sum(attn[:, :, None] * enc3, axis=1)                # (B, H) f32

    # ---- fused ctx projection: [W_ih[ctx] | fc_out[ctx]] (padded 128-wide group)
    cproj = jnp.dot(ctx.astype(cdt), w_ref[:H, woff["w_c"]:woff["w_c"] + 128],
                    preferred_element_type=jnp.float32)           # (B, 128)

    # ---- x projection (embedding Linear folded into GRU input weights)
    gix = jnp.dot(x.astype(cdt), w_ref[:I, woff["w_xg"]:woff["w_xg"] + 128],
                  preferred_element_type=jnp.float32)             # (B, 128)

    gi = gix + cproj + b_ref[:, boff["b_g"]:boff["b_g"] + 128]    # lanes [:3H] valid

    # ---- single-step GRU (PyTorch gate ordering r, z, n) -- all f32 VPU/EUP
    r = jax.nn.sigmoid(gi[:, :H] + gh[:, :H])
    z = jax.nn.sigmoid(gi[:, H:2 * H] + gh[:, H:2 * H])
    n = jnp.tanh(gi[:, 2 * H:3 * H] + r * gh[:, 2 * H:3 * H])
    h_new = (1.0 - z) * n + z * h                                 # (B, H)
    h_sc[...] = h_new                                             # carry to next step

    # ---- output head (fc_out split; padded 128-wide group)
    predh = jnp.dot(h_new.astype(cdt), w_ref[:H, woff["w_oh"]:woff["w_oh"] + 128],
                    preferred_element_type=jnp.float32)
    pred = predh[:, :O] + cproj[:, 3 * H:3 * H + O] \
        + b_ref[:, boff["b_out"]:boff["b_out"] + O]               # (B, O)

    # ---- one lane-dense 128-wide store per step: [pred | h_new | attn | zeros]
    pieces = [pred, h_new, attn]
    pad = out_ref.shape[-1] - (O + H + S)
    if pad:
        pieces.append(jnp.zeros((B, pad), jnp.float32))
    out_ref[0] = jnp.concatenate(pieces, axis=1)


# ------------------------------ wrapper ------------------------------------ #
def _round_up(x, m):
    return (x + m - 1) // m * m


def _pack_groups(named_arrays, rows, align=128):
    """Pad each 2-D group to (rows, ceil(c/align)*align) and concatenate along lanes."""
    pieces, offs, col = [], {}, 0
    for name, a in named_arrays:
        a = jnp.asarray(a, jnp.float32)
        r, c = a.shape
        cp = _round_up(c, align)
        pieces.append(jnp.pad(a, ((0, rows - r), (0, cp - c))))
        offs[name] = col
        col += cp
    return jnp.concatenate(pieces, axis=1), offs


def attention_decoder_decode(x_seq, hidden, encoder_outputs, params, *,
                             compute_dtype=jnp.float32):
    """Run T decode steps in one kernel launch (T=1 == the module's forward).

    x_seq: (B, T, I), hidden: (1, B, H), encoder_outputs: (B, S, H).
    Returns (predictions (B, T, O), hidden (1, B, H), attention_weights (B, T, S)).
    """
    B, T, I = x_seq.shape
    _, S, H = encoder_outputs.shape
    O = params["w_out"].shape[1]

    x_t = jnp.transpose(x_seq, (1, 0, 2)).astype(jnp.float32)        # (T, B, I)
    h0 = hidden[-1].astype(jnp.float32)                              # (B, H)  (num_layers=1)
    enc2 = encoder_outputs.reshape(B * S, H).astype(jnp.float32)     # flattened in wrapper

    # ---- offline algebraic folds (exact; dropout p=0 is identity) -------- #
    w_ih_x = params["w_ih"][:H, :]                                   # (H, 3H)
    w_ih_c = params["w_ih"][H:, :]                                   # (H, 3H)
    w_xg = params["w_emb"] @ w_ih_x                                  # (I, 3H)
    b_g = params["b_emb"] @ w_ih_x + params["b_ih"]                  # (1, 3H)
    w_h = jnp.concatenate([params["w_hh"], params["w1"]], axis=1)    # (H, 4H) = [gh | w1]
    b_h = jnp.concatenate([params["b_hh"], params["b1"]], axis=1)    # (1, 4H)
    w_c = jnp.concatenate([w_ih_c, params["w_out"][H:, :]], axis=1)  # (H, 3H+O)
    w_oh = params["w_out"][:H, :]                                    # (H, O)

    rows = _round_up(max(I, H), 8)
    w_slab, woff = _pack_groups(
        [("w_h", w_h), ("w2", params["w2"]), ("w_c", w_c),
         ("w_oh", w_oh), ("w_xg", w_xg)], rows)
    w_slab = w_slab.astype(compute_dtype)           # bf16 halves resident weight bytes
    b_slab, boff = _pack_groups(
        [("b_h", b_h), ("b2", params["b2"]), ("b_g", b_g),
         ("b_out", params["b_out"]), ("v_w", params["v_w"])], 1)     # biases stay f32

    out_cols = _round_up(O + H + S, 128)

    kernel = functools.partial(_attn_decoder_kernel, B=B, S=S, H=H, I=I, O=O,
                               woff=woff, boff=boff, compute_dtype=compute_dtype)

    out = pl.pallas_call(
        kernel,
        out_shape=jax.ShapeDtypeStruct((T, B, out_cols), jnp.float32),
        grid=(T,),
        in_specs=[
            pl.BlockSpec((1, B, I), lambda t: (t, 0, 0)),            # x_t streams per step
            pl.BlockSpec((B, H), lambda t: (0, 0)),                  # h0: DMA'd once
            pl.BlockSpec((B * S, H), lambda t: (0, 0)),              # enc: DMA'd once
            pl.BlockSpec(w_slab.shape, lambda t: (0, 0)),            # weights: resident
            pl.BlockSpec(b_slab.shape, lambda t: (0, 0)),            # biases: resident
        ],
        out_specs=pl.BlockSpec((1, B, out_cols), lambda t: (t, 0, 0)),
        scratch_shapes=[pltpu.VMEM((B, H), jnp.float32)],            # carried hidden state
        compiler_params=pltpu.CompilerParams(
            dimension_semantics=("arbitrary",)),                     # sequential carry over T
    )(x_t, h0, enc2, w_slab, b_slab)

    preds = jnp.transpose(out[:, :, :O], (1, 0, 2))                  # (B, T, O)
    h_fin = out[T - 1, :, O:O + H][None]                             # (1, B, H)
    attn = jnp.transpose(out[:, :, O + H:O + H + S], (1, 0, 2))      # (B, T, S)
    return preds, h_fin, attn


def attention_decoder_forward(x, hidden, encoder_outputs, params, *,
                              compute_dtype=jnp.float32):
    """Exactly the PyTorch module's single-step forward.
    x: (B,1,I) -> (prediction (B,1,O), hidden (1,B,H), attention_weights (B,S,1))."""
    B = x.shape[0]
    S = encoder_outputs.shape[1]
    preds, h_new, attn = attention_decoder_decode(
        x, hidden, encoder_outputs, params, compute_dtype=compute_dtype)
    return preds, h_new, attn[:, 0, :].reshape(B, S, 1)


# ----------------------- deterministic parameter init --------------------- #
def init_params(key, input_size, hidden_size, output_size):
    ks = jax.random.split(key, 16)

    def lin(kw, kb, fan_in, fan_out):
        bound = 1.0 / jnp.sqrt(fan_in)
        w = jax.random.uniform(kw, (fan_in, fan_out), jnp.float32, -bound, bound)
        b = jax.random.uniform(kb, (1, fan_out), jnp.float32, -bound, bound)
        return w, b

    H = hidden_size
    w_emb, b_emb = lin(ks[0], ks[1], input_size, H)
    w1, b1 = lin(ks[2], ks[3], H, H)
    w2, b2 = lin(ks[4], ks[5], H, H)
    v_w_full, v_b_full = lin(ks[6], ks[7], H, 1)        # (H,1), (1,1)
    v_w = v_w_full.T                                     # store as (1, H)
    v_b = v_b_full                                       # (1, 1) -- cancelled by softmax
    w_ih, b_ih = lin(ks[8], ks[9], 2 * H, 3 * H)         # GRU input weights (pre-transposed)
    w_hh, b_hh = lin(ks[10], ks[11], H, 3 * H)           # GRU hidden weights (pre-transposed)
    w_out, b_out = lin(ks[12], ks[13], 2 * H, output_size)

    return dict(w_emb=w_emb, b_emb=b_emb, w1=w1, b1=b1, w2=w2, b2=b2,
                v_w=v_w, v_b=v_b, w_ih=w_ih, b_ih=b_ih, w_hh=w_hh, b_hh=b_hh,
                w_out=w_out, b_out=b_out)


# ------------------------------- reference -------------------------------- #
def reference_forward(x, hidden, enc, p):
    """Pure-JAX, unfused original math (incl. v_b). Returns 2-D pred/h/attn."""
    B, _, I = x.shape
    H = hidden.shape[-1]
    x2 = x.reshape(B, I)
    h = hidden[-1]
    x_emb = x2 @ p["w_emb"] + p["b_emb"]
    energy = jnp.tanh((h @ p["w1"] + p["b1"])[:, None, :] + enc @ p["w2"] + p["b2"])
    scores = jnp.einsum("bsh,h->bs", energy, p["v_w"][0]) + p["v_b"][0, 0]
    attn = jax.nn.softmax(scores, axis=1)
    ctx = jnp.einsum("bs,bsh->bh", attn, enc)
    gi = jnp.concatenate([x_emb, ctx], 1) @ p["w_ih"] + p["b_ih"]
    gh = h @ p["w_hh"] + p["b_hh"]
    r = jax.nn.sigmoid(gi[:, :H] + gh[:, :H])
    z = jax.nn.sigmoid(gi[:, H:2 * H] + gh[:, H:2 * H])
    n = jnp.tanh(gi[:, 2 * H:] + r * gh[:, 2 * H:])
    h_new = (1 - z) * n + z * h
    pred = jnp.concatenate([h_new, ctx], 1) @ p["w_out"] + p["b_out"]
    return pred, h_new, attn


# --------------------------------- main ------------------------------------ #
if __name__ == "__main__":
    B, S, T = 2, 8, 4
    input_size, hidden_size, output_size = 16, 32, 16

    key = jax.random.PRNGKey(0)
    k_x, k_h, k_e, k_p, k_seq = jax.random.split(key, 5)

    x = jax.random.normal(k_x, (B, 1, input_size), jnp.float32)
    hidden = jax.random.normal(k_h, (1, B, hidden_size), jnp.float32)
    encoder_outputs = jax.random.normal(k_e, (B, S, hidden_size), jnp.float32)
    params = init_params(k_p, input_size, hidden_size, output_size)

    # 1) single decode step (the module's forward), f32 MXU -- 2e-3 tolerance
    pred, h_new, attn = attention_decoder_forward(x, hidden, encoder_outputs, params)
    jax.block_until_ready((pred, h_new, attn))
    pred_r, h_r, attn_r = reference_forward(x, hidden, encoder_outputs, params)
    assert pred.shape == (B, 1, output_size)
    assert h_new.shape == (1, B, hidden_size)
    assert attn.shape == (B, S, 1)
    assert jnp.allclose(pred.reshape(B, output_size), pred_r, atol=2e-3)
    assert jnp.allclose(h_new.reshape(B, hidden_size), h_r, atol=2e-3)
    assert jnp.allclose(attn.reshape(B, S), attn_r, atol=2e-3)

    # 2) T-step decode in ONE launch (weights/enc resident, hidden carried in VMEM scratch)
    x_seq = jax.random.normal(k_seq, (B, T, input_size), jnp.float32)
    preds, h_fin, attns = attention_decoder_decode(x_seq, hidden, encoder_outputs, params)
    jax.block_until_ready((preds, h_fin, attns))
    h_cur = hidden
    for t in range(T):
        p_r, h_step, a_r = reference_forward(x_seq[:, t:t + 1, :], h_cur,
                                             encoder_outputs, params)
        assert jnp.allclose(preds[:, t, :], p_r, atol=2e-3)
        assert jnp.allclose(attns[:, t, :], a_r, atol=2e-3)
        h_cur = h_step[None]
    assert jnp.allclose(h_fin[0], h_cur[0], atol=2e-3)

    # 3) bf16 MXU operands (f32 accumulate + f32 elementwise); tolerance widened for the
    #    bf16 operand rounding (values are O(1), so 3e-2 abs ~= 3% rel worst case).
    pred_b, h_b, attn_b = attention_decoder_forward(
        x, hidden, encoder_outputs, params, compute_dtype=jnp.bfloat16)
    jax.block_until_ready((pred_b, h_b, attn_b))
    assert jnp.allclose(pred_b.reshape(B, output_size), pred_r, atol=3e-2)
    assert jnp.allclose(h_b.reshape(B, hidden_size), h_r, atol=3e-2)
    assert jnp.allclose(attn_b.reshape(B, S), attn_r, atol=3e-2)

    print("KERNEL_OK")
</pallas_src>

<mosaic_0001>
module attributes {stable_mosaic.version = 11 : i64} {
  func.func @_attn_decoder_kernel(%arg0: i32, %arg1: memref<1x2x16xf32, #tpu.memory_space<vmem>>, %arg2: memref<2x32xf32, #tpu.memory_space<vmem>>, %arg3: memref<16x32xf32, #tpu.memory_space<vmem>>, %arg4: memref<32x640xf32, #tpu.memory_space<vmem>>, %arg5: memref<1x640xf32, #tpu.memory_space<vmem>>, %arg6: memref<1x2x128xf32, #tpu.memory_space<vmem>>, %arg7: memref<2x32xf32, #tpu.memory_space<vmem>>) attributes {dimension_semantics = [#tpu.dimension_semantics<arbitrary>], iteration_bounds = array<i64: 1>, scalar_prefetch = 0 : i64, scratch_operands = 1 : i64, tpu.core_type = #tpu.core_type<tc>, window_params = [{transform_indices = @transform_0, window_bounds = array<i64: 1, 2, 16>}, {pipeline_mode = #tpu.pipeline_mode<synchronous>, transform_indices = @transform_1, window_bounds = array<i64: 2, 32>}, {pipeline_mode = #tpu.pipeline_mode<synchronous>, transform_indices = @transform_2, window_bounds = array<i64: 16, 32>}, {pipeline_mode = #tpu.pipeline_mode<synchronous>, transform_indices = @transform_3, window_bounds = array<i64: 32, 640>}, {pipeline_mode = #tpu.pipeline_mode<synchronous>, transform_indices = @transform_4, window_bounds = array<i64: 1, 640>}, {transform_indices = @transform_5, window_bounds = array<i64: 1, 2, 128>}]} {
    %c0_i32 = arith.constant 0 : i32
    %0 = arith.cmpi eq, %arg0, %c0_i32 : i32
    %1 = arith.extui %0 : i1 to i32
    %c0_i32_0 = arith.constant 0 : i32
    %2 = arith.cmpi ne, %1, %c0_i32_0 : i32
    scf.if %2 {
      %c0_40 = arith.constant 0 : index
      %c0_41 = arith.constant 0 : index
      %93 = vector.load %arg2[%c0_40, %c0_41] : memref<2x32xf32, #tpu.memory_space<vmem>>, vector<2x32xf32>
      %c0_42 = arith.constant 0 : index
      %c0_43 = arith.constant 0 : index
      %94 = vector.load %arg7[%c0_42, %c0_43] : memref<2x32xf32, #tpu.memory_space<vmem>>, vector<2x32xf32>
      tpu.vector_store %arg7[%c0_42, %c0_43], %93 {strides = array<i32>} : memref<2x32xf32, #tpu.memory_space<vmem>>, vector<2x32xf32>,
    } else {
    }
    %c0 = arith.constant 0 : index
    %c0_1 = arith.constant 0 : index
    %3 = vector.load %arg7[%c0, %c0_1] : memref<2x32xf32, #tpu.memory_space<vmem>>, vector<2x32xf32>
    %c0_2 = arith.constant 0 : index
    %c0_3 = arith.constant 0 : index
    %c0_4 = arith.constant 0 : index
    %4 = vector.load %arg1[%c0_2, %c0_3, %c0_4] : memref<1x2x16xf32, #tpu.memory_space<vmem>>, vector<1x2x16xf32>
    %5 = vector.shape_cast %4 : vector<1x2x16xf32> to vector<2x16xf32>
    %c0_5 = arith.constant 0 : index
    %c0_6 = arith.constant 0 : index
    %6 = vector.load %arg3[%c0_5, %c0_6] : memref<16x32xf32, #tpu.memory_space<vmem>>, vector<16x32xf32>
    %7 = vector.shape_cast %6 : vector<16x32xf32> to vector<2x8x32xf32>
    %c0_7 = arith.constant 0 : index
    %c0_8 = arith.constant 0 : index
    %8 = vector.load %arg4[%c0_7, %c0_8] : memref<32x640xf32, #tpu.memory_space<vmem>>, vector<32x128xf32>
    %cst = arith.constant dense<0.000000e+00> : vector<2x128xf32>
    %9 = tpu.matmul %3, %8, %cst {dimension_numbers = #tpu.dot_dimension_numbers<[1], [0], [0], [1], [0, 0, 1, 1], [], []>} : vector<2x32xf32>, vector<32x128xf32>, vector<2x128xf32> -> vector<2x128xf32>
    %c0_9 = arith.constant 0 : index
    %c0_10 = arith.constant 0 : index
    %10 = vector.load %arg5[%c0_9, %c0_10] : memref<1x640xf32, #tpu.memory_space<vmem>>, vector<1x128xf32>
    %11 = vector.broadcast %10 : vector<1x128xf32> to vector<2x128xf32>
    %12 = arith.addf %9, %11 : vector<2x128xf32>
    %13 = vector.extract_strided_slice %12 {offsets = [0, 0], sizes = [2, 96], strides = [1, 1]} : vector<2x128xf32> to vector<2x96xf32>
    %14 = vector.extract_strided_slice %12 {offsets = [0, 96], sizes = [2, 32], strides = [1, 1]} : vector<2x128xf32> to vector<2x32xf32>
    %c0_11 = arith.constant 0 : index
    %c128 = arith.constant 128 : index
    %15 = vector.load %arg4[%c0_11, %c128] : memref<32x640xf32, #tpu.memory_space<vmem>>, vector<32x128xf32>
    %cst_12 = arith.constant dense<0.000000e+00> : vector<16x128xf32>
    %16 = tpu.matmul %6, %15, %cst_12 {dimension_numbers = #tpu.dot_dimension_numbers<[1], [0], [0], [1], [0, 0, 1, 1], [], []>} : vector<16x32xf32>, vector<32x128xf32>, vector<16x128xf32> -> vector<16x128xf32>
    %c0_13 = arith.constant 0 : index
    %c128_14 = arith.constant 128 : index
    %17 = vector.load %arg5[%c0_13, %c128_14] : memref<1x640xf32, #tpu.memory_space<vmem>>, vector<1x128xf32>
    %18 = vector.broadcast %17 : vector<1x128xf32> to vector<16x128xf32>
    %19 = arith.addf %16, %18 : vector<16x128xf32>
    %20 = vector.extract_strided_slice %19 {offsets = [0, 0], sizes = [16, 32], strides = [1, 1]} : vector<16x128xf32> to vector<16x32xf32>
    %21 = vector.shape_cast %14 : vector<2x32xf32> to vector<2x1x32xf32>
    %22 = vector.shape_cast %20 : vector<16x32xf32> to vector<2x8x32xf32>
    %23 = vector.broadcast %21 : vector<2x1x32xf32> to vector<2x8x32xf32>
    %24 = arith.addf %23, %22 : vector<2x8x32xf32>
    %25 = math.tanh %24 : vector<2x8x32xf32>
    %c0_15 = arith.constant 0 : index
    %c512 = arith.constant 512 : index
    %26 = vector.load %arg5[%c0_15, %c512] : memref<1x640xf32, #tpu.memory_space<vmem>>, vector<1x32xf32>
    %27 = vector.shape_cast %26 : vector<1x32xf32> to vector<1x1x32xf32>
    %28 = vector.broadcast %27 : vector<1x1x32xf32> to vector<2x8x32xf32>
    %29 = arith.mulf %25, %28 : vector<2x8x32xf32>
    %cst_16 = arith.constant dense<0.000000e+00> : vector<2x8xf32>
    %30 = vector.multi_reduction <add>, %29, %cst_16 [2] : vector<2x8x32xf32> to vector<2x8xf32>
    %cst_17 = arith.constant dense<0xFF800000> : vector<2xf32>
    %31 = vector.multi_reduction <maximumf>, %30, %cst_17 [1] : vector<2x8xf32> to vector<2xf32>
    %32 = vector.shape_cast %31 : vector<2xf32> to vector<2x1xf32>
    %33 = vector.broadcast %32 : vector<2x1xf32> to vector<2x8xf32>
    %34 = arith.subf %30, %33 : vector<2x8xf32>
    %35 = math.exp %34 : vector<2x8xf32>
    %cst_18 = arith.constant dense<0.000000e+00> : vector<2xf32>
    %36 = vector.multi_reduction <add>, %35, %cst_18 [1] : vector<2x8xf32> to vector<2xf32>
    %37 = vector.shape_cast %36 : vector<2xf32> to vector<2x1xf32>
    %38 = tpu.reciprocal %37 {approx = true} : vector<2x1xf32> -> vector<2x1xf32>
    %39 = vector.broadcast %38 : vector<2x1xf32> to vector<2x8xf32>
    %40 = arith.mulf %35, %39 : vector<2x8xf32>
    %41 = vector.shape_cast %40 : vector<2x8xf32> to vector<2x8x1xf32>
    %42 = vector.broadcast %41 : vector<2x8x1xf32> to vector<2x8x32xf32>
    %43 = arith.mulf %42, %7 : vector<2x8x32xf32>
    %cst_19 = arith.constant dense<0.000000e+00> : vector<2x32xf32>
    %44 = vector.multi_reduction <add>, %43, %cst_19 [1] : vector<2x8x32xf32> to vector<2x32xf32>
    %c0_20 = arith.constant 0 : index
    %c256 = arith.constant 256 : index
    %45 = vector.load %arg4[%c0_20, %c256] : memref<32x640xf32, #tpu.memory_space<vmem>>, vector<32x128xf32>
    %cst_21 = arith.constant dense<0.000000e+00> : vector<2x128xf32>
    %46 = tpu.matmul %44, %45, %cst_21 {dimension_numbers = #tpu.dot_dimension_numbers<[1], [0], [0], [1], [0, 0, 1, 1], [], []>} : vector<2x32xf32>, vector<32x128xf32>, vector<2x128xf32> -> vector<2x128xf32>
    %c0_22 = arith.constant 0 : index
    %c512_23 = arith.constant 512 : index
    %47 = vector.load %arg4[%c0_22, %c512_23] : memref<32x640xf32, #tpu.memory_space<vmem>>, vector<16x128xf32>
    %cst_24 = arith.constant dense<0.000000e+00> : vector<2x128xf32>
    %48 = tpu.matmul %5, %47, %cst_24 {dimension_numbers = #tpu.dot_dimension_numbers<[1], [0], [0], [1], [0, 0, 1, 1], [], []>} : vector<2x16xf32>, vector<16x128xf32>, vector<2x128xf32> -> vector<2x128xf32>
    %49 = arith.addf %48, %46 : vector<2x128xf32>
    %c0_25 = arith.constant 0 : index
    %c256_26 = arith.constant 256 : index
    %50 = vector.load %arg5[%c0_25, %c256_26] : memref<1x640xf32, #tpu.memory_space<vmem>>, vector<1x128xf32>
    %51 = vector.broadcast %50 : vector<1x128xf32> to vector<2x128xf32>
    %52 = arith.addf %49, %51 : vector<2x128xf32>
    %53 = vector.extract_strided_slice %52 {offsets = [0, 0], sizes = [2, 32], strides = [1, 1]} : vector<2x128xf32> to vector<2x32xf32>
    %54 = vector.extract_strided_slice %13 {offsets = [0, 0], sizes = [2, 32], strides = [1, 1]} : vector<2x96xf32> to vector<2x32xf32>
    %55 = arith.addf %53, %54 : vector<2x32xf32>
    %56 = arith.negf %55 : vector<2x32xf32>
    %57 = math.exp %56 : vector<2x32xf32>
    %cst_27 = arith.constant 1.000000e+00 : f32
    %58 = vector.broadcast %cst_27 : f32 to vector<2x32xf32>
    %59 = arith.addf %58, %57 : vector<2x32xf32>
    %60 = arith.divf %58, %59 : vector<2x32xf32>
    %61 = vector.extract_strided_slice %52 {offsets = [0, 32], sizes = [2, 32], strides = [1, 1]} : vector<2x128xf32> to vector<2x32xf32>
    %62 = vector.extract_strided_slice %13 {offsets = [0, 32], sizes = [2, 32], strides = [1, 1]} : vector<2x96xf32> to vector<2x32xf32>
    %63 = arith.addf %61, %62 : vector<2x32xf32>
    %64 = arith.negf %63 : vector<2x32xf32>
    %65 = math.exp %64 : vector<2x32xf32>
    %cst_28 = arith.constant 1.000000e+00 : f32
    %66 = vector.broadcast %cst_28 : f32 to vector<2x32xf32>
    %67 = arith.addf %66, %65 : vector<2x32xf32>
    %68 = arith.divf %66, %67 : vector<2x32xf32>
    %69 = vector.extract_strided_slice %52 {offsets = [0, 64], sizes = [2, 32], strides = [1, 1]} : vector<2x128xf32> to vector<2x32xf32>
    %70 = vector.extract_strided_slice %13 {offsets = [0, 64], sizes = [2, 32], strides = [1, 1]} : vector<2x96xf32> to vector<2x32xf32>
    %71 = arith.mulf %60, %70 : vector<2x32xf32>
    %72 = arith.addf %69, %71 : vector<2x32xf32>
    %73 = math.tanh %72 : vector<2x32xf32>
    %cst_29 = arith.constant 1.000000e+00 : f32
    %74 = vector.broadcast %cst_29 : f32 to vector<2x32xf32>
    %75 = arith.subf %74, %68 : vector<2x32xf32>
    %76 = arith.mulf %75, %73 : vector<2x32xf32>
    %77 = arith.mulf %68, %3 : vector<2x32xf32>
    %78 = arith.addf %76, %77 : vector<2x32xf32>
    %c0_30 = arith.constant 0 : index
    %c0_31 = arith.constant 0 : index
    %79 = vector.load %arg7[%c0_30, %c0_31] : memref<2x32xf32, #tpu.memory_space<vmem>>, vector<2x32xf32>
    tpu.vector_store %arg7[%c0_30, %c0_31], %78 {strides = array<i32>} : memref<2x32xf32, #tpu.memory_space<vmem>>, vector<2x32xf32>,
    %c0_32 = arith.constant 0 : index
    %c384 = arith.constant 384 : index
    %80 = vector.load %arg4[%c0_32, %c384] : memref<32x640xf32, #tpu.memory_space<vmem>>, vector<32x128xf32>
    %cst_33 = arith.constant dense<0.000000e+00> : vector<2x128xf32>
    %81 = tpu.matmul %78, %80, %cst_33 {dimension_numbers = #tpu.dot_dimension_numbers<[1], [0], [0], [1], [0, 0, 1, 1], [], []>} : vector<2x32xf32>, vector<32x128xf32>, vector<2x128xf32> -> vector<2x128xf32>
    %82 = vector.extract_strided_slice %81 {offsets = [0, 0], sizes = [2, 16], strides = [1, 1]} : vector<2x128xf32> to vector<2x16xf32>
    %83 = vector.extract_strided_slice %46 {offsets = [0, 96], sizes = [2, 16], strides = [1, 1]} : vector<2x128xf32> to vector<2x16xf32>
    %84 = arith.addf %82, %83 : vector<2x16xf32>
    %c0_34 = arith.constant 0 : index
    %c384_35 = arith.constant 384 : index
    %85 = vector.load %arg5[%c0_34, %c384_35] : memref<1x640xf32, #tpu.memory_space<vmem>>, vector<1x16xf32>
    %86 = vector.broadcast %85 : vector<1x16xf32> to vector<2x16xf32>
    %87 = arith.addf %84, %86 : vector<2x16xf32>
    %cst_36 = arith.constant 0.000000e+00 : f32
    %88 = vector.broadcast %cst_36 : f32 to vector<2x72xf32>
    %89 = tpu.concatenate %87, %78, %40, %88 in 1 : vector<2x16xf32>, vector<2x32xf32>, vector<2x8xf32>, vector<2x72xf32> -> vector<2x128xf32>
    %c0_37 = arith.constant 0 : index
    %c0_38 = arith.constant 0 : index
    %c0_39 = arith.constant 0 : index
    %90 = vector.load %arg6[%c0_37, %c0_38, %c0_39] : memref<1x2x128xf32, #tpu.memory_space<vmem>>, vector<1x2x128xf32>
    %91 = vector.shape_cast %90 : vector<1x2x128xf32> to vector<2x128xf32>
    %92 = vector.shape_cast %89 : vector<2x128xf32> to vector<1x2x128xf32>
    tpu.vector_store %arg6[%c0_37, %c0_38, %c0_39], %92 {strides = array<i32>} : memref<1x2x128xf32, #tpu.memory_space<vmem>>, vector<1x2x128xf32>,
    return
  }
  func.func @transform_0(%arg0: i32) -> (i32, i32, i32) {
    %c0_i32 = arith.constant 0 : i32
    %c0_i32_0 = arith.constant 0 : i32
    %c0_i32_1 = arith.constant 0 : i32
    return %arg0, %c0_i32, %c0_i32_0 : i32, i32, i32
  }
  func.func @transform_1(%arg0: i32) -> (i32, i32) {
    %c0_i32 = arith.constant 0 : i32
    %c0_i32_0 = arith.constant 0 : i32
    %c0_i32_1 = arith.constant 0 : i32
    return %c0_i32, %c0_i32_0 : i32, i32
  }
  func.func @transform_2(%arg0: i32) -> (i32, i32) {
    %c0_i32 = arith.constant 0 : i32
    %c0_i32_0 = arith.constant 0 : i32
    %c0_i32_1 = arith.constant 0 : i32
    return %c0_i32, %c0_i32_0 : i32, i32
  }
  func.func @transform_3(%arg0: i32) -> (i32, i32) {
    %c0_i32 = arith.constant 0 : i32
    %c0_i32_0 = arith.constant 0 : i32
    %c0_i32_1 = arith.constant 0 : i32
    return %c0_i32, %c0_i32_0 : i32, i32
  }
  func.func @transform_4(%arg0: i32) -> (i32, i32) {
    %c0_i32 = arith.constant 0 : i32
    %c0_i32_0 = arith.constant 0 : i32
    %c0_i32_1 = arith.constant 0 : i32
    return %c0_i32, %c0_i32_0 : i32, i32
  }
  func.func @transform_5(%arg0: i32) -> (i32, i32, i32) {
    %c0_i32 = arith.constant 0 : i32
    %c0_i32_0 = arith.constant 0 : i32
    %c0_i32_1 = arith.constant 0 : i32
    return %arg0, %c0_i32, %c0_i32_0 : i32, i32, i32
  }
}

</mosaic_0001>

<bundles_post_ra>
// kernel: tpu_custom_call.1
= control target key start
LH: loop header
LB: loop body
LE: loop exit
PB: predicated region body
PF: predicated region fallthrough
CT: control target
= control target key end

     0   :  { %10 = vsyncpa [#allocation4], 0  ;;  %s1151_s0 = inlined_call_operand.hbm [shape: f32[1,2,16], index: 0, kind: input, shape index: {}]   ;;  %s1152_s1 = inlined_call_operand.hbm [shape: f32[2,32], index: 1, kind: input, shape index: {}]   ;;  %s1153_s2 = inlined_call_operand.hbm [shape: f32[16,32], index: 2, kind: input, shape index: {}]   ;;  %s1154_s3 = inlined_call_operand.hbm [shape: f32[32,640], index: 3, kind: input, shape index: {}]   ;;  %s1155_s4 = inlined_call_operand.vmem [shape: f32[1,640], index: 4, kind: input, shape index: {}]   ;;  %s1156_s5 = inlined_call_operand.hbm [shape: f32[1,2,128], index: 5, kind: output, shape index: {}]  }
   0x1   :  { %11 = vsyncpa [#allocation7], 0 }
   0x2   :  { %12 = vsyncpa [#allocation10], 0 }
   0x3   :  { %13 = vsyncpa [#allocation5], 0  ;;  %s980_s18 = smov [#allocation6]   ;;  %s981_s20 = smov [#allocation3]  }
   0x4   :  { %s30_s19 = sshll.u32 %s980_s18, 4  ;;  %s20_s21 = sshll.u32 %s981_s20, 4  ;;  %s31_s19 = int_to_ptr.vmem [resolvable:$true] %s30_s19  ;;  %s21_s21 = int_to_ptr.vmem [resolvable:$true] %s20_s21 }
   0x5   :  { %s880_s22 = scalar_lea.vmem %s31_s19, 32  ;;  %p885_p1 = scmp.lt.s32.totalorder %s31_s19, %s31_s19 }
   0x6   :  { %p881_p0 = scmp.ne.s32.totalorder %s31_s19, %s880_s22  ;;  %p886_p2 = scmp.lt.s32.totalorder %s880_s22, %s880_s22 }
   0x8   :  { %p887_p3 = por %p886_p2, %p885_p1 }
   0xa   :  { %p888_p4 = pnand %p887_p3, %p881_p0 }
   0xc   :  { %891 = shalt.err (!%p888_p4)
}
   0xd   :  { %33 = dma.hbm_to_vmem [thread:$0]  %s1152_s1, 32, %s31_s19, [#allocation7]  }
   0xe   :  { %s900_s25 = scalar_lea.vmem %s21_s21, 32  ;;  %p905_p6 = scmp.lt.s32.totalorder %s21_s21, %s21_s21 }
   0xf   :  { %p901_p5 = scmp.ne.s32.totalorder %s21_s21, %s900_s25  ;;  %p906_p7 = scmp.lt.s32.totalorder %s900_s25, %s900_s25 }
  0x11   :  { %p907_p8 = por %p906_p7, %p905_p6 }
  0x13   :  { %p908_p9 = pnand %p907_p8, %p901_p5 }
  0x15   :  { %911 = shalt.err (!%p908_p9)
}
  0x16   :  { %23 = dma.hbm_to_vmem [thread:$0]  %s1151_s0, 32, %s21_s21, [#allocation4]  }
  0x17   :  { %s982_s28 = smov [#allocation8]  }
  0x18   :  { %s39_s29 = sshll.u32 %s982_s28, 4  ;;  %s40_s29 = int_to_ptr.vmem [resolvable:$true] %s39_s29 }
  0x19   :  { %s920_s30 = scalar_lea.vmem %s40_s29, 256  ;;  %p925_p11 = scmp.lt.s32.totalorder %s40_s29, %s40_s29 }
  0x1a   :  { %p921_p10 = scmp.ne.s32.totalorder %s40_s29, %s920_s30  ;;  %p926_p12 = scmp.lt.s32.totalorder %s920_s30, %s920_s30 }
  0x1c   :  { %p927_p13 = por %p926_p12, %p925_p11 }
  0x1e   :  { %p928_p0 = pnand %p927_p13, %p921_p10 }
  0x20   :  { %931 = shalt.err (!%p928_p0)
}
  0x21   :  { %s983_s1 = smov 128   ;;  %s984_s6 = smov 8  }
  0x22   :  { %45 = dma.hbm_to_vmem [thread:$0]  %s1153_s2, 256, %s40_s29, [#allocation7], %s983_s1, %s983_s1, %s984_s6  }
  0x23   :  { %s985_s9 = smov [#allocation9]  }
  0x24   :  { %s51_s10 = sshll.u32 %s985_s9, 4  ;;  %s52_s10 = int_to_ptr.vmem [resolvable:$true] %s51_s10 }
  0x25   :  { %s940_s0 = scalar_lea.vmem %s52_s10, 2560  ;;  %p945_p2 = scmp.lt.s32.totalorder %s52_s10, %s52_s10 }
  0x26   :  { %p941_p1 = scmp.ne.s32.totalorder %s52_s10, %s940_s0  ;;  %p946_p3 = scmp.lt.s32.totalorder %s940_s0, %s940_s0 }
  0x28   :  { %p947_p4 = por %p946_p3, %p945_p2 }
  0x2a   :  { %p948_p5 = pnand %p947_p4, %p941_p1 }
  0x2c   :  { %951 = shalt.err (!%p948_p5)
}
  0x2d   :  { %s986_s11 = smov 640   ;;  %s987_s12 = smov 40  }
  0x2e   :  { %57 = dma.hbm_to_vmem [thread:$0]  %s1154_s3, 2560, %s52_s10, [#allocation10], %s986_s11, %s986_s11, %s987_s12  }
  0x2f   :  { %972 = dma.done.wait [#allocation4], 32  }
  0x30   :  { %973 = vsyncadd [#allocation4], 4294967264 }
  0x31   :  { %974 = dma.done.wait [#allocation7], 288  }
  0x32   :  { %975 = vsyncadd [#allocation7], 4294967008 }
  0x33   :  { %976 = dma.done.wait [#allocation10], 2560  }
  0x34   :  { %977 = vsyncadd [#allocation10], 4294964736  ;;  %v988_v0 = vmov 0.0   ;;  %vm989_vm0 = vmmov 0   ;;  %vm94_vm1 = vcmask 261120   ;;  %v171_v1 = vld [vmem:[#allocation9 + $0x80] sm:$0xff]  ;;  %v264_v23 = vlaneseq }
  0x35   :  { %786 = vmatprep.subr.mxu0 %v988_v0  ;;  %794 = vmatprep.mubr.msk.f32.mxu0 %vm989_vm0, %v988_v0  ;;  %v170_v2 = vld [vmem:[#allocation9 + $0x58] sm:$0xff]  ;;  %v1042_v3 = vld [vmem:[#allocation8] sm:$0xff]  ;;  %vm77_vm2 = vcmask 254976   ;;  %v76_v7 = vld [vmem:[#allocation6] sm:$0x3]  ;;  %s990_s15 = smov 96  }
  0x36   :  { %797 = vmatprep.subr.mxu1 %v171_v1  ;;  %v169_v4 = vld [vmem:[#allocation9 + $0x30] sm:$0xff]  ;;  %805 = vmatprep.mubr.msk.f32.mxu1 %vm94_vm1, %v1042_v3  ;;  %v86_v5 = vld [vmem:[#allocation9 + $0x78] sm:$0xff]  ;;  %v168_v8 = vld [vmem:[#allocation9 + $0x8] sm:$0xff]  ;;  %78 = vst.msk [vmem:[#allocation2] sm:$0x3] %vm77_vm2, %v76_v7  ;;  %v1073_v25 = vshrl.u32 %v264_v23, 7 }
  0x37   :  { %798 = vmatpush3.msra.mxu1 %v171_v1  ;;  %v85_v6 = vld [vmem:[#allocation9 + $0x50] sm:$0xff]  ;;  %787 = vmatpush3.msra.mxu0 %v86_v5  ;;  %v84_v9 = vld [vmem:[#allocation9 + $0x28] sm:$0xff]  ;;  %v1048_v10 = vld [vmem:[#allocation8 + $0x8] sm:$0xff]  ;;  %v991_v21 = vmov 1966171168   ;;  %s992_s20 = smov 32  }
  0x38   :  { %799 = vmatprep.subr.mxu1 %v170_v2  ;;  %788 = vmatprep.subr.mxu0 %v988_v0  ;;  %v83_v11 = vld [vmem:[#allocation9] sm:$0xff]  ;;  %v755_v13 = vld [vmem:[%s1155_s4 + $0x4] ss:$0 sm:$0xff]  ;;  %v752_v15 = vld [vmem:[%s1155_s4 + $0x1] ss:$0 sm:$0xff]  ;;  %v262_v22 = vunpack.c.l.s4 %v991_v21  ;;  %v1083_v30 = vsub.s32 0, %v1073_v25 }
  0x39   :  { %800 = vmatpush3.msra.mxu1 %v170_v2  ;;  %789 = vmatpush3.msra.mxu0 %v85_v6  ;;  %v750_v26 = vld [vmem:[%s1155_s4] ss:$0 sm:$0xff]  ;;  %v1091_v49 = vand.u32 127, %v264_v23  ;;  %vm342_vm3 = vcmask 1041409   ;;  %vm345_vm4 = vcmask 58368   ;;  %v993_v57 = vmov 0  }
  0x3a   :  { %801 = vmatprep.subr.mxu1 %v169_v4  ;;  %790 = vmatprep.subr.mxu0 %v988_v0  ;;  %v263_v24 = vunpack.c.0.s8 %v262_v22  ;;  %v356_v58 = vsub.s32 1, %v1073_v25  ;;  %s994_s21 = smov 64   ;;  %v429_v21 = vld [vmem:[#allocation9 + $0x60] sm:$0xff]  ;;  %v507_v22 = vld [vmem:[#allocation9 + $0x48] sm:$0xff]  ;;  %v428_v23 = vld [vmem:[#allocation9 + $0x38] sm:$0xff]  ;;  %vm508_vm5 = vcmask 130048  }
  0x3b   :  { %802 = vmatpush3.msra.mxu1 %v169_v4  ;;  %791 = vmatpush3.msra.mxu0 %v84_v9  ;;  %v336_v50 = vsub.s32 %v1091_v49, %v1073_v25  ;;  %s995_s24 = smov 112   ;;  %vm728_vm6 = vcmask 392192   ;;  %s996_s27 = smov [#allocation11]   ;;  %vm730_vm7 = vcmask 457728  }
  0x3c   :  { %803 = vmatprep.subr.mxu1 %v168_v8  ;;  %792 = vmatprep.subr.mxu0 %v988_v0  ;;  %v266_v28 = vsub.s32 %v263_v24, %v1073_v25  ;;  %v506_v24 = vld [vmem:[#allocation9 + $0x20] sm:$0xff]  ;;  %s739_s28 = sshll.u32 %s996_s27, 4  ;;  %s740_s28 = int_to_ptr.vmem [resolvable:$true] %s739_s28 }
  0x3d   :  { %804 = vmatpush3.msra.mxu1 %v168_v8  ;;  %793 = vmatpush3.msra.mxu0 %v83_v11  ;;  %v1056_v12 = vld [vmem:[#allocation2] sm:$0x3]  ;;  %p957_p7 = scmp.lt.s32.totalorder %s740_s28, %s740_s28 }
  0x3e   :  { %806 = vmatmul.mubr.msk.f32.vlgmr.msra.gmra.mxu1 %vm94_vm1, %v1048_v10  ;;  %808 = vmatprep.subr.mxu0 %v988_v0 }
  0x3f   :  { %819 = vmatprep.subr.mxu1 %v988_v0  ;;  %823 = vmatprep.mubr.msk.f32.mxu1 %vm989_vm0, %v988_v0 }
  0x40   :  { %795 = vmatmul.mubr.msk.f32.vlgmr.msra.gmra.mxu0 %vm94_vm1, %v1056_v12  ;;  %311 = vrot.lane.b32.xlu1 %v755_v13, %s990_s15 }
  0x41   :  { %816 = vmatprep.mubr.msk.f32.mxu0 %vm989_vm0, %v988_v0  ;;  %855 = vset.pattern.permute.xlu0 %v993_v57 }
  0x42   :  { %854 = vset.pattern.permute.xlu1 %v993_v57  ;;  %820 = vmatpush3.msra.mxu1 %v507_v22 }
  0x43   :  { %821 = vmatprep.subr.mxu1 %v988_v0 }
  0x44   :  { %822 = vmatpush3.msra.mxu1 %v506_v24 }
  0x45   :  { %826 = vmatprep.subr.mxu1 %v988_v0 }
  0xb2   :  { %v312_v40 = vpop.permute.xlu1 %311 }
  0xfe   :  { %v807_v14 = vpop.f32.mrf.mxu1 }
  0xff   :  { %v257_v20 = vadd.f32 %v807_v14, %v752_v15 }
 0x100   :  { %v251_v16 = vpop.f32.mrf.mxu1  ;;  %v164_v18 = vpop.f32.mrf.mxu0 }
 0x101   :  { %v252_v17 = vadd.f32 %v752_v15, %v251_v16  ;;  %v1078_v27 = vadd.f32 %v750_v26, %v164_v18  ;;  %v80_v26 = vld [vmem:[#allocation3] sm:$0x3] }
 0x102   :  { %v796_v19 = vpop.f32.mrf.mxu0  ;;  %824 = vmatmul.mubr.msk.f32.vlgmr.msra.gmra.mxu1 %vm508_vm5, %v80_v26 }
 0x103   :  { %295 = vrot.lane.b32.xlu0 %v252_v17, %s990_s15  ;;  %v267_v29 = vrot.slane %v1078_v27, %v266_v28  ;;  %834 = vmatprep.mubr.msk.f32.mxu1 %vm989_vm0, %v988_v0 }
 0x105   :  { %v275_v31 = vrot.slane %v267_v29, %v266_v28  ;;  %v268_v32 = vcombine.high %v267_v29, %v267_v29 }
 0x107   :  { %297 = vrot.lane.b32.xlu0 %v257_v20, %s990_s15  ;;  %v286_v33 = vrot.slane %v275_v31, %v1083_v30  ;;  %v282_v34 = vrot.slane %v268_v32, %v266_v28  ;;  %v430_v20 = vld [vmem:[#allocation9 + $0x88] sm:$0xff]  ;;  %v427_v28 = vld [vmem:[#allocation9 + $0x10] sm:$0xff] }
 0x108   :  { %809 = vmatpush3.msra.mxu0 %v430_v20 }
 0x109   :  { %v290_v37 = vrot.slane %v282_v34, %v1083_v30  ;;  %810 = vmatprep.subr.mxu0 %v988_v0 }
 0x10a   :  { %811 = vmatpush3.msra.mxu0 %v429_v21 }
 0x10b   :  { %812 = vmatprep.subr.mxu0 %v988_v0 }
 0x10c   :  { %813 = vmatpush3.msra.mxu0 %v428_v23 }
 0x10d   :  { %814 = vmatprep.subr.mxu0 %v988_v0 }
 0x10e   :  { %815 = vmatpush3.msra.mxu0 %v427_v28 }
 0x175   :  { %v296_v35 = vpop.permute.xlu0 %295 }
 0x176   :  { %v301_v36 = vadd.f32 %v296_v35, %v286_v33 }
 0x178   :  { %856 = vtanh.f32 %v301_v36 }
 0x179   :  { %v298_v38 = vpop.permute.xlu0 %297 }
 0x17a   :  { %v302_v39 = vadd.f32 %v298_v38, %v290_v37 }
 0x17c   :  { %858 = vtanh.f32 %v302_v39 }
 0x185   :  { %v857_v41 = vpop.eup %856 }
 0x186   :  { %v314_v42 = vmul.f32 %v857_v41, %v312_v40 }
 0x188   :  { %318 = vrot.lane.b32.xlu1 %v314_v42, %s992_s20 }
 0x189   :  { %v859_v43 = vpop.eup %858 }
 0x18a   :  { %v315_v44 = vmul.f32 %v859_v43, %v312_v40 }
 0x18c   :  { %320 = vrot.lane.b32.xlu0 %v315_v44, %s992_s20 }
 0x1fa   :  { %v319_v45 = vpop.permute.xlu1 %318 }
 0x1fb   :  { %v324_v46 = vsel %vm94_vm1, %v319_v45, 0.0 }
 0x1fc   :  { %325 = vadd.xlane.f32.xlu1 %v324_v46 }
 0x1fe   :  { %v321_v47 = vpop.permute.xlu0 %320 }
 0x1ff   :  { %v327_v48 = vsel %vm94_vm1, %v321_v47, 0.0  ;;  %v578_v47 = vpop.f32.mrf.mxu1 }
 0x200   :  { %328 = vadd.xlane.f32.xlu0 %v327_v48 }
 0x201   :  { %v825_v48 = vpop.f32.mrf.mxu1 }
 0x285   :  { %v326_v51 = vpop.xlane.xlu1 %325 }
 0x286   :  { %v337_v53 = vrot.slane %v326_v51, %v336_v50 }
 0x289   :  { %v329_v52 = vpop.xlane.xlu0 %328 }
 0x28a   :  { %v341_v54 = vrot.slane %v329_v52, %v336_v50 }
 0x28c   :  { %v343_v55 = vsel %vm342_vm3, %v341_v54, %v337_v53 }
 0x28d   :  { %v346_v56 = vsel %vm345_vm4, %v343_v55, -inf }
 0x28e   :  { %347 = vmax.xlane.f32.xlu0 %v346_v56 }
 0x317   :  { %v348_v59 = vpop.xlane.xlu0 %347 }
 0x318   :  { %v353_v60 = vrot.slane %v348_v59, %v1083_v30  ;;  %v357_v61 = vrot.slane %v348_v59, %v356_v58 }
 0x31a   :  { %v360_v62 = vsub.f32 %v326_v51, %v353_v60  ;;  %v361_v63 = vsub.f32 %v329_v52, %v357_v61 }
 0x31c   :  { %v362_v1 = vmul.f32 1.442695, %v360_v62  ;;  %v364_v2 = vmul.f32 1.442695, %v361_v63 }
 0x31e   :  { %860 = vpow2.f32 %v362_v1  ;;  %v627_v1 = vld [vmem:[#allocation9 + $0x90] sm:$0xff] }
 0x31f   :  { %862 = vpow2.f32 %v364_v2  ;;  %v626_v2 = vld [vmem:[#allocation9 + $0x68] sm:$0xff]  ;;  %827 = vmatpush3.msra.mxu1 %v627_v1 }
 0x320   :  { %828 = vmatprep.subr.mxu1 %v988_v0 }
 0x321   :  { %829 = vmatpush3.msra.mxu1 %v626_v2 }
 0x322   :  { %830 = vmatprep.subr.mxu1 %v988_v0 }
 0x32b   :  { %v861_v4 = vpop.eup %860 }
 0x32c   :  { %v863_v5 = vpop.eup %862  ;;  %369 = vperm.xlu1 %854, %v861_v4  }
 0x32d   :  { %372 = vperm.xlu0 %855, %v863_v5  }
 0x3a7   :  { %v370_v6 = vpop.permute.xlu1 %369 }
 0x3a8   :  { %v373_v7 = vpop.permute.xlu0 %372  ;;  %v377_v8 = vrot.slane %v370_v6, %v336_v50 }
 0x3a9   :  { %v381_v9 = vrot.slane %v373_v7, %v336_v50  ;;  %v758_v50 = vld [vmem:[%s1155_s4 + $0x2] ss:$0 sm:$0xff] }
 0x3ab   :  { %v382_v11 = vsel %vm342_vm3, %v381_v9, %v377_v8 }
 0x3ac   :  { %v384_v13 = vsel %vm345_vm4, %v382_v11, 0.0 }
 0x3ad   :  { %385 = vadd.xlane.f32.xlu1 %v384_v13 }
 0x3be   :  { %597 = vrot.lane.b32.xlu1 %v1078_v27, %s994_s21 }
 0x436   :  { %v386_v14 = vpop.xlane.xlu1 %385 }
 0x437   :  { %864 = vrcp.f32 %v386_v14 }
 0x43a   :  { %v598_v59 = vpop.permute.xlu1 %597 }
 0x444   :  { %v865_v15 = vpop.eup %864 }
 0x445   :  { %v392_v16 = vrot.slane %v865_v15, %v1083_v30  ;;  %v396_v18 = vrot.slane %v865_v15, %v356_v58 }
 0x447   :  { %v399_v17 = vmul.f32 %v861_v4, %v392_v16  ;;  %v400_v19 = vmul.f32 %v863_v5, %v396_v18  ;;  %v624_v4 = vld [vmem:[#allocation9 + $0x18] sm:$0xff]  ;;  %v761_v16 = vld [vmem:[%s1155_s4 + $0x3] ss:$0 sm:$0xff]  ;;  %s952_s4 = scalar_lea.vmem %s740_s28, 32 }
 0x448   :  { %p953_p6 = scmp.ne.s32.totalorder %s740_s28, %s952_s4  ;;  %p958_p8 = scmp.lt.s32.totalorder %s952_s4, %s952_s4 }
 0x449   :  { %403 = vperm.xlu0 %855, %v399_v17  }
 0x44a   :  { %p959_p9 = por %p958_p8, %p957_p7 }
 0x44c   :  { %p960_p10 = pnand %p959_p9, %p953_p6 }
 0x44d   :  { %408 = vperm.xlu0 %855, %v400_v19  }
 0x4c4   :  { %v1112_v29 = vpop.permute.xlu0 %403 }
 0x4c5   :  { %v411_v30 = vmul.f32 %v1112_v29, %v1042_v3 }
 0x4c7   :  { %v413_v31 = vsel %vm94_vm1, %v411_v30, 0.0 }
 0x4c8   :  { %v414_v32 = vrot.slane %v413_v31, 4  ;;  %v1117_v33 = vpop.permute.xlu0 %408 }
 0x4c9   :  { %v412_v34 = vmul.f32 %v1117_v33, %v1048_v10 }
 0x4ca   :  { %v415_v35 = vadd.f32 %v414_v32, %v413_v31 }
 0x4cb   :  { %v420_v36 = vsel %vm94_vm1, %v412_v34, 0.0 }
 0x4cc   :  { %v416_v37 = vrot.slane %v415_v35, 2  ;;  %v421_v38 = vrot.slane %v420_v36, 4 }
 0x4ce   :  { %v417_v39 = vadd.f32 %v416_v37, %v415_v35  ;;  %v422_v40 = vadd.f32 %v421_v38, %v420_v36 }
 0x4d0   :  { %v423_v41 = vrot.slane %v422_v40, 2  ;;  %v418_v42 = vrot.slane %v417_v39, 1 }
 0x4d2   :  { %v424_v43 = vadd.f32 %v423_v41, %v422_v40  ;;  %v419_v3 = vadd.f32 %v418_v42, %v417_v39 }
 0x4d4   :  { %v425_v44 = vrot.slane %v424_v43, 1 }
 0x4d6   :  { %v426_v45 = vadd.f32 %v425_v44, %v424_v43 }
 0x4d8   :  { %v433_v46 = vsel %vm342_vm3, %v426_v45, %v419_v3 }
 0x4d9   :  { %817 = vmatmul.mubr.msk.f32.vlgmr.msra.gmra.mxu0 %vm94_vm1, %v433_v46 }
 0x599   :  { %v502_v10 = vpop.f32.mrf.mxu0 }
 0x59a   :  { %v579_v51 = vadd.f32 %v578_v47, %v502_v10  ;;  %701 = vrot.lane.b32.xlu1 %v502_v10, %s992_s20 }
 0x59b   :  { %v818_v52 = vpop.f32.mrf.mxu0 }
 0x59c   :  { %v589_v53 = vadd.f32 %v758_v50, %v579_v51 }
 0x59e   :  { %v590_v54 = vadd.f32 %v589_v53, %v1078_v27  ;;  %v625_v27 = vld [vmem:[#allocation9 + $0x40] sm:$0xff] }
 0x59f   :  { %831 = vmatpush3.msra.mxu1 %v625_v27 }
 0x5a0   :  { %v759_v55 = vmul.f32 -1.442695, %v590_v54  ;;  %832 = vmatprep.subr.mxu1 %v988_v0 }
 0x5a1   :  { %833 = vmatpush3.msra.mxu1 %v624_v4 }
 0x5a2   :  { %866 = vpow2.f32 %v759_v55 }
 0x5af   :  { %v867_v56 = vpop.eup %866 }
 0x5b0   :  { %v594_v57 = vadd.f32 1.0, %v867_v56 }
 0x5b2   :  { %868 = vrcp.f32 %v594_v57 }
 0x5bf   :  { %v869_v58 = vpop.eup %868 }
 0x5c0   :  { %v600_v60 = vmul.f32 %v869_v58, %v598_v59  ;;  %v607_v6 = vsub.f32 1.0, %v869_v58 }
 0x5c2   :  { %602 = vrot.lane.b32.xlu0 %v600_v60, %s994_s21 }
 0x60c   :  { %v702_v14 = vpop.permute.xlu1 %701 }
 0x634   :  { %v603_v61 = vpop.permute.xlu0 %602 }
 0x635   :  { %v605_v62 = vadd.f32 %v603_v61, %v589_v53 }
 0x637   :  { %870 = vtanh.f32 %v605_v62 }
 0x644   :  { %v871_v63 = vpop.eup %870 }
 0x645   :  { %609 = vrot.lane.b32.xlu0 %v871_v63, %s990_s15 }
 0x649   :  { %613 = vrot.lane.b32.xlu0 %v1056_v12, %s992_s20  ;;  %v716_v12 = vadd.s32 4294967248, %v1091_v49 }
 0x64b   :  { %v719_v0 = vsub.s32 %v716_v12, %v1073_v25 }
 0x64d   :  { %v724_v17 = vrot.slane %v1117_v33, %v719_v0  ;;  %v720_v20 = vrot.slane %v1112_v29, %v719_v0 }
 0x64f   :  { %v725_v25 = vsel %vm342_vm3, %v724_v17, %v720_v20 }
 0x6b7   :  { %v610_v5 = vpop.permute.xlu0 %609 }
 0x6b8   :  { %v612_v8 = vmul.f32 %v610_v5, %v607_v6 }
 0x6bb   :  { %v614_v7 = vpop.permute.xlu0 %613 }
 0x6bc   :  { %v616_v9 = vmul.f32 %v869_v58, %v614_v7 }
 0x6be   :  { %v617_v11 = vadd.f32 %v616_v9, %v612_v8 }
 0x6c0   :  { %619 = vrot.lane.b32.xlu0 %v617_v11, %s990_s15 }
 0x6c4   :  { %713 = vrot.lane.b32.xlu0 %v617_v11, %s995_s24 }
 0x732   :  { %v620_v13 = vpop.permute.xlu0 %619 }
 0x733   :  { %623 = vst.msk [vmem:[#allocation2] sm:$0x3] %vm77_vm2, %v620_v13  ;;  %835 = vmatmul.mubr.msk.f32.vlgmr.msra.gmra.mxu1 %vm94_vm1, %v620_v13 }
 0x736   :  { %v714_v22 = vpop.permute.xlu0 %713 }
 0x7f3   :  { %v696_v15 = vpop.f32.mrf.mxu1 }
 0x7f4   :  { %v704_v18 = vadd.f32 %v702_v14, %v696_v15 }
 0x7f5   :  { %v836_v19 = vpop.f32.mrf.mxu1 }
 0x7f6   :  { %v712_v21 = vadd.f32 %v761_v16, %v704_v18 }
 0x7f8   :  { %v727_v49 = vsel %vm508_vm5, %v712_v21, %v714_v22 }
 0x7f9   :  { %v729_v23 = vsel %vm728_vm6, %v727_v49, %v725_v25 }
 0x7fa   :  { %v731_v24 = vsel %vm730_vm7, %v729_v23, 0.0 }
 0x7fb   :  { %732 = vst [vmem:[#allocation11] sm:$0x3] %v731_v24 }
 0x7fc   :  { %963 = shalt.err (!%p960_p10)
}
 0x7fd   :  { %742 = dma.vmem_to_hbm [thread:$0]  %s740_s28, 32, %s1156_s5, [#allocation5]  }
 0x7fe   :  { %978 = dma.done.wait [#allocation5], 32  }
 0x7ff   :  { %979 = vsyncadd [#allocation5], 4294967264 }
 0x800   :  { %746 = vsyncpa [#allocation4], 1 }
 0x801   :  { %747 = vsyncpa [#allocation7], 1 }
 0x802   :  { %748 = vsyncpa [#allocation10], 1 }
 0x803   :  { %749 = vsyncpa [#allocation5], 1 }

</bundles_post_ra>
